<compile_context>
chip_gen: v7x
topology: tpu7x:2x2x1
jax: 0.10.0
libtpu: 0.0.40
codegen_flags: <defaults>
</compile_context>

<pallas_src>
import jax
import jax.numpy as jnp
from jax.experimental import pallas as pl
from jax.experimental.pallas import tpu as pltpu


def _round_up(x, m):
    return ((x + m - 1) // m) * m


def _vmem_capacity_bytes():
    try:
        return int(pltpu.get_tpu_info().vmem_capacity_bytes)
    except Exception:
        return 64 << 20  # conservative default (v7x per-TensorCore VMEM)


def _spatial_attention_kernel(x_ref, w_ref, b_ref, o_ref):
    # x_ref: (B_t, C, T)  native dtype, VMEM  -- spatial tile of B_t batch elements
    # w_ref: (1, C, 1)    f32, VMEM           -- 1x1-conv weights (one per channel)
    # b_ref: (1,)         f32, SMEM           -- conv bias
    # o_ref: (B_t, C, T)  native dtype, VMEM  -- gated output tile
    x = x_ref[...].astype(jnp.float32)
    # 1x1 conv over channels: full-vreg multiply + sublane (XLU) reduce.
    logits = jnp.sum(x * w_ref[...], axis=1, keepdims=True) + b_ref[0]  # (B_t, 1, T)
    # sigmoid via EUP exp; exact reciprocal (approx=True is a free micro-opt if
    # the caller tolerates approximate-EUP precision).
    attn = pl.reciprocal(1.0 + jnp.exp(-logits))
    o_ref[...] = (x * attn).astype(o_ref.dtype)


def spatial_attention(x_nchw, weight, bias):
    """x_nchw: (B, C, H, W); weight: (1, C, 1, 1); bias: (1,). Returns (B, C, H, W)."""
    B, C, H, W = x_nchw.shape
    HW = H * W
    itemsize = jnp.dtype(x_nchw.dtype).itemsize

    # ---- byte-sized tiling ------------------------------------------------------
    vmem_cap = _vmem_capacity_bytes()             # 64 MiB (v7x) / 128 MiB (v5e/v6e)
    vmem_limit = min(vmem_cap // 2, 64 << 20)     # 32 MiB on v7x, 64 MiB on v5e/v6e
    tile_budget = vmem_limit // 8                 # per input tile: double-buffered
                                                  # in + out + f32 intermediates
    hw128 = _round_up(HW, 128)
    tile_hw = max(128, min(hw128,
                           ((tile_budget // max(C * itemsize, 1)) // 128) * 128))

    # If one batch element's whole feature map is small, block several batch
    # elements per grid step; keep >=2 batch blocks so v7x's two TensorCores both
    # get work.
    b_tile = 1
    if tile_hw >= hw128 and B > 1:
        per_b_bytes = C * tile_hw * itemsize
        b_tile = max(1, min(B, tile_budget // max(per_b_bytes, 1)))
        b_tile = min(b_tile, max(1, (B + 1) // 2))

    # Safety valve for extreme channel counts where even the minimum 128-lane tile
    # is large.
    step_bytes = b_tile * C * tile_hw * itemsize
    vmem_limit = max(vmem_limit, min(vmem_cap, 8 * step_bytes))

    grid = (pl.cdiv(B, b_tile), pl.cdiv(HW, tile_hw))

    x_flat = x_nchw.reshape(B, C, HW)                        # free reshape, native dtype
    w = weight.reshape(1, C, 1).astype(jnp.float32)
    b = bias.reshape(1).astype(jnp.float32)

    out_flat = pl.pallas_call(
        _spatial_attention_kernel,
        out_shape=jax.ShapeDtypeStruct((B, C, HW), x_nchw.dtype),
        grid_spec=pltpu.PrefetchScalarGridSpec(
            num_scalar_prefetch=0,
            grid=grid,
            in_specs=[
                pl.BlockSpec((b_tile, C, tile_hw), lambda bi, si: (bi, 0, si)),
                pl.BlockSpec((1, C, 1), lambda bi, si: (0, 0, 0)),        # weights, VMEM
                pl.BlockSpec(memory_space=pltpu.MemorySpace.SMEM),        # bias
            ],
            out_specs=pl.BlockSpec((b_tile, C, tile_hw), lambda bi, si: (bi, 0, si)),
        ),
        compiler_params=pltpu.CompilerParams(
            dimension_semantics=("parallel", "parallel"),
            vmem_limit_bytes=int(vmem_limit),
        ),
    )(x_flat, w, b)

    return out_flat.reshape(B, C, H, W)


def reference_spatial_attention(x_nchw, weight, bias):
    # Pure-JAX reference mirroring the PyTorch forward (1x1 conv + sigmoid gate).
    w = weight.reshape(1, -1, 1, 1)
    logits = jnp.sum(x_nchw * w, axis=1, keepdims=True) + bias.reshape(1, 1, 1, 1)
    return x_nchw * jax.nn.sigmoid(logits)


if __name__ == "__main__":
    key = jax.random.PRNGKey(0)
    kx, kw, kb = jax.random.split(key, 3)

    B, C, H, W = 2, 4, 16, 16
    x = jax.random.normal(kx, (B, C, H, W), dtype=jnp.float32)

    # Deterministic "Conv2d(C, 1, kernel_size=1)" parameters (synthetic, not a checkpoint).
    fan_in = C  # kernel_size=1 -> fan_in = in_channels
    bound = 1.0 / (fan_in ** 0.5)
    weight = jax.random.uniform(kw, (1, C, 1, 1), minval=-bound, maxval=bound,
                                dtype=jnp.float32)
    bias = jax.random.uniform(kb, (1,), minval=-bound, maxval=bound,
                              dtype=jnp.float32)

    # f32 path
    out = jax.block_until_ready(spatial_attention(x, weight, bias))
    ref = reference_spatial_attention(x, weight, bias)
    assert out.shape == (B, C, H, W) and out.dtype == x.dtype
    assert jnp.allclose(out, ref, atol=1e-5, rtol=1e-5)

    # bf16 path: native dtype travels through HBM, f32 compute inside the kernel.
    x_bf = x.astype(jnp.bfloat16)
    out_bf = jax.block_until_ready(spatial_attention(x_bf, weight, bias))
    ref_bf = reference_spatial_attention(x_bf.astype(jnp.float32), weight, bias)
    assert out_bf.dtype == jnp.bfloat16
    assert jnp.allclose(out_bf.astype(jnp.float32), ref_bf, atol=5e-2, rtol=5e-2)

    print("KERNEL_OK")
</pallas_src>

<mosaic_0001>
module attributes {stable_mosaic.version = 11 : i64} {
  func.func @_spatial_attention_kernel(%arg0: i32, %arg1: i32, %arg2: memref<1x4x256xf32, #tpu.memory_space<vmem>>, %arg3: memref<1x4x1xf32, #tpu.memory_space<vmem>>, %arg4: memref<1xf32, #tpu.memory_space<smem>>, %arg5: memref<1x4x256xf32, #tpu.memory_space<vmem>>) attributes {dimension_semantics = [#tpu.dimension_semantics<parallel>, #tpu.dimension_semantics<parallel>], iteration_bounds = array<i64: 2, 1>, scalar_prefetch = 0 : i64, scratch_operands = 0 : i64, tpu.core_type = #tpu.core_type<tc>, window_params = [{transform_indices = @transform_0, window_bounds = array<i64: 1, 4, 256>}, {pipeline_mode = #tpu.pipeline_mode<synchronous>, transform_indices = @transform_1, window_bounds = array<i64: 1, 4, 1>}, {transform_indices = @transform_2, window_bounds = array<i64: 1>}, {transform_indices = @transform_3, window_bounds = array<i64: 1, 4, 256>}]} {
    %c0 = arith.constant 0 : index
    %c0_0 = arith.constant 0 : index
    %c0_1 = arith.constant 0 : index
    %0 = vector.load %arg2[%c0, %c0_0, %c0_1] : memref<1x4x256xf32, #tpu.memory_space<vmem>>, vector<1x4x256xf32>
    %c0_2 = arith.constant 0 : index
    %c0_3 = arith.constant 0 : index
    %c0_4 = arith.constant 0 : index
    %1 = vector.load %arg3[%c0_2, %c0_3, %c0_4] : memref<1x4x1xf32, #tpu.memory_space<vmem>>, vector<1x4x1xf32>
    %2 = vector.broadcast %1 : vector<1x4x1xf32> to vector<1x4x256xf32>
    %3 = arith.mulf %0, %2 : vector<1x4x256xf32>
    %cst = arith.constant dense<0.000000e+00> : vector<1x256xf32>
    %4 = vector.multi_reduction <add>, %3, %cst [1] : vector<1x4x256xf32> to vector<1x256xf32>
    %5 = vector.shape_cast %4 : vector<1x256xf32> to vector<1x1x256xf32>
    %c0_5 = arith.constant 0 : index
    %6 = memref.load %arg4[%c0_5] : memref<1xf32, #tpu.memory_space<smem>>
    %7 = vector.broadcast %6 : f32 to vector<1x1x256xf32>
    %8 = arith.addf %5, %7 : vector<1x1x256xf32>
    %cst_6 = arith.constant 0.000000e+00 : f32
    %9 = vector.broadcast %cst_6 : f32 to vector<1x1x256xf32>
    %10 = arith.subf %9, %8 : vector<1x1x256xf32>
    %11 = math.exp %10 : vector<1x1x256xf32>
    %cst_7 = arith.constant 1.000000e+00 : f32
    %12 = vector.broadcast %cst_7 : f32 to vector<1x1x256xf32>
    %13 = arith.addf %12, %11 : vector<1x1x256xf32>
    %14 = tpu.reciprocal %13 : vector<1x1x256xf32> -> vector<1x1x256xf32>
    %15 = vector.broadcast %14 : vector<1x1x256xf32> to vector<1x4x256xf32>
    %16 = arith.mulf %0, %15 : vector<1x4x256xf32>
    %c0_8 = arith.constant 0 : index
    %c0_9 = arith.constant 0 : index
    %c0_10 = arith.constant 0 : index
    %17 = vector.load %arg5[%c0_8, %c0_9, %c0_10] : memref<1x4x256xf32, #tpu.memory_space<vmem>>, vector<1x4x256xf32>
    tpu.vector_store %arg5[%c0_8, %c0_9, %c0_10], %16 {strides = array<i32>} : memref<1x4x256xf32, #tpu.memory_space<vmem>>, vector<1x4x256xf32>,
    return
  }
  func.func @transform_0(%arg0: i32, %arg1: i32) -> (i32, i32, i32) {
    %c0_i32 = arith.constant 0 : i32
    %c0_i32_0 = arith.constant 0 : i32
    return %arg0, %c0_i32, %arg1 : i32, i32, i32
  }
  func.func @transform_1(%arg0: i32, %arg1: i32) -> (i32, i32, i32) {
    %c0_i32 = arith.constant 0 : i32
    %c0_i32_0 = arith.constant 0 : i32
    %c0_i32_1 = arith.constant 0 : i32
    %c0_i32_2 = arith.constant 0 : i32
    return %c0_i32, %c0_i32_0, %c0_i32_1 : i32, i32, i32
  }
  func.func @transform_2(%arg0: i32, %arg1: i32) -> i32 {
    %c0_i32 = arith.constant 0 : i32
    %c0_i32_0 = arith.constant 0 : i32
    return %c0_i32 : i32
  }
  func.func @transform_3(%arg0: i32, %arg1: i32) -> (i32, i32, i32) {
    %c0_i32 = arith.constant 0 : i32
    %c0_i32_0 = arith.constant 0 : i32
    return %arg0, %c0_i32, %arg1 : i32, i32, i32
  }
}

</mosaic_0001>

<bundles_post_ra>
// kernel: tpu_custom_call.1
= control target key start
LH: loop header
LB: loop body
LE: loop exit
PB: predicated region body
PF: predicated region fallthrough
CT: control target
= control target key end

     0   :  { %s772_s0 = inlined_call_operand.hbm [shape: f32[2,4,256], index: 0, kind: input, shape index: {}]   ;;  %s773_s1 = inlined_call_operand.vmem [shape: f32[1,4,1], index: 1, kind: input, shape index: {}]   ;;  %s774_s2 = inlined_call_operand.<no memory space> [shape: f32[1], index: 2, kind: input, shape index: {}]   ;;  %s775_s3 = inlined_call_operand.hbm [shape: f32[2,4,256], index: 3, kind: output, shape index: {}]  }
   0x1   :  { %8 = sst [smem:[#allocation2]] %s774_s2 }
   0x2   :  { %9 = vsyncpa [#allocation4], 0 }
   0x3   :  { %11 = vsyncpa [#allocation4 + $0x1], 0 }
   0x4   :  { %12 = vsyncpa [#allocation5], 0 }
   0x5   :  { %14 = vsyncpa [#allocation5 + $0x1], 0  ;;  %s593_s14 = smov 0   ;;  %s595_s15 = smov 0  }
   0x6   :  { %s597_s16 = smov 0   ;;  %s599_s17 = smov 0  }
   0x7   :  { %s601_s18 = smov 0   ;;  %s603_s19 = smov 0  }
   0x8 LB: > { %s362_s2 = sadd.s32 4294967295, %s564_s19   ;;  %s363_s20 = sadd.s32 4294967294, %s564_s19   ;;  %s564_s19 = sphi %s603_s19, %s20_s19   ;;  %s560_s18 = sphi %s601_s18, %s791_s18   ;;  %s556_s17 = sphi %s599_s17, %s790_s17   ;;  %s552_s16 = sphi %s597_s16, %s789_s16   ;;  %s548_s15 = sphi %s595_s15, %s788_s15   ;;  %s544_s14 = sphi %s593_s14, %s787_s14  }
   0x9   : > { %s32_s21 = sadd.s32 1, %s560_s18  ;;  %s41_s22 = sadd.s32 1, %s552_s16 }
   0xa   : > { %p34_p0 = scmp.ge.s32.totalorder %s32_s21, 2  ;;  %p48_p1 = scmp.ne.s32.totalorder %s552_s16, %s548_s15 }
   0xb   : > { %p49_p2 = scmp.eq.s32.totalorder %s564_s19, 0  ;;  %p54_p3 = scmp.ne.s32.totalorder %s548_s15, %s544_s14 }
   0xc   : > { %s793_s21 = smov (%p34_p0, %s32_s21), 0  ;;  %p55_p5 = scmp.eq.s32.totalorder %s362_s2, 0 }
   0xd   : > { %p634_p4 = por %p49_p2, %p48_p1  ;;  %s36_s24 = ssub.s32 %s560_s18, %s793_s21 }
   0xe   : > { %p122_p6 = scmp.eq.s32.totalorder %s362_s2, 1  ;;  %p39_p7 = scmp.eq.s32.totalorder %s36_s24, 0 }
   0xf   : > { %p640_p8 = por %p55_p5, %p54_p3  ;;  %p128_p10 = scmp.eq.s32.totalorder %s363_s20, 1 }
  0x10   : > { %p644_p9 = por %p122_p6, %p48_p1  ;;  %p391_p13 = scmp.lt.s32.totalorder %s564_s19, 2 }
  0x11   : > { %s649_s27 = scalar_select %p39_p7, %s552_s16, %s41_s22  }
  0x12   : > { %s779_s26 = scalar_select %p644_p9, 1, 0 }
  0x13   : > { %p651_p11 = por %p128_p10, %p54_p3  ;;  %s154_s29 = sand.u32 1, %s552_s16  }
  0x14   : > { %s366_s30 = sshll.u32 %s154_s29, 3  ;;  %s377_s4 = sshll.u32 %s560_s18, 7 }
  0x15   : > { %s780_s28 = scalar_select %p651_p11, 1, 0 }
  0x16   : > { %s662_s7 = scalar_lea.hbm %s772_s0, %s377_s4  ;;  %s158_s8 = scalar_lea.vmem [#allocation3], %s366_s30 }
  0x17   : > { %s168_s9 = sshll.u32 %s158_s8, 4  ;;  %p668_p0 = pnand %p391_p13, %p634_p4  ;;  %s664_s9 = int_to_ptr.vmem [resolvable:$true] %s168_s9 }
  0x18   : > { %s155_s11 = scalar_lea.sflag [#allocation4], %s154_s29  ;;  %s452_s12 = scalar_lea.hbm %s662_s7, 128 }
  0x19   : > { %p453_p3 = scmp.ne.s32.totalorder %s662_s7, %s452_s12  ;;  %p454_p5 = pneg %p668_p0 }
  0x1a   : > { %s457_s20 = scalar_lea.hbm %s772_s0, 256  ;;  %p458_p4 = scmp.lt.u32.totalorder %s662_s7, %s772_s0 }
  0x1b   : > { %p455_p6 = pnand %p454_p5, %p453_p3  ;;  %p459_p10 = scmp.lt.u32.totalorder %s457_s20, %s452_s12 }
  0x1c   : > { %p461_p12 = scmp.lt.u32.totalorder %s452_s12, %s662_s7 }
  0x1d   : > { %p456_p7 = pneg %p455_p6  ;;  %p460_p13 = por %p459_p10, %p458_p4 }
  0x1f   : > { %p462_p1 = por %p461_p12, %p460_p13 }
  0x21   : > { %p463_p2 = pnand %p462_p1, %p456_p7 }
  0x23   : > { %466 = shalt.err (!%p463_p2)
}
  0x24   : > { %s467_s24 = scalar_lea.vmem %s664_s9, 128  ;;  %s566_s29 = smov [#allocation3]  }
  0x25   : > { %p468_p3 = scmp.ne.s32.totalorder %s664_s9, %s467_s24  ;;  %s472_s30 = sshll.u32 %s566_s29, 4  ;;  %s473_s30 = int_to_ptr.vmem [resolvable:$false] %s472_s30 }
  0x26   : > { %s474_s4 = scalar_lea.vmem %s473_s30, 256  ;;  %p475_p9 = scmp.lt.s32.totalorder %s664_s9, %s473_s30 }
  0x27   : > { %p470_p6 = pnand %p468_p3, %p454_p5  ;;  %p476_p4 = scmp.lt.s32.totalorder %s474_s4, %s467_s24 }
  0x29   : > { %p471_p11 = pneg %p470_p6  ;;  %p477_p10 = por %p476_p4, %p475_p9 }
  0x2b   : > { %p478_p12 = pnand %p477_p10, %p471_p11 }
  0x2d   : > { %481 = shalt.err (!%p478_p12)
}
  0x2e   : > { %386 = dma.hbm_to_vmem [thread:$0]  (!%p668_p0), %s662_s7, 128, %s664_s9, %s155_s11  }
  0x2f   : > { %p782_p1 = scmp.lt.s32.totalorder %s564_s19, 3  ;;  %p783_p2 = scmp.ge.s32.totalorder %s564_s19, 1 }
  0x31   : > { %p174_p5 = pnand %p783_p2, %p782_p1 }
  0x32   : > { %s704_s5 = sand.u32 (!%p174_p5), 1, %s548_s15  }
  0x33   : > { %177 = sbr.rel (%p174_p5) target bundleno = 256 (0x100), region = 32  ;;  %s370_s6 = sshll.u32 (!%p174_p5), %s704_s5, 3 }
  0x34   : > { %s180_s8 = scalar_lea.sflag (!%p174_p5), [#allocation4], %s704_s5  ;;  %s183_s10 = scalar_lea.vmem (!%p174_p5), [#allocation3], %s370_s6 }
  0x3a   : > { %535 = dma.done.wait (%p640_p8), %s180_s8, 128  }
  0x3b   : > { %537 = vsyncadd (%p640_p8), %s180_s8, 4294967168  ;;  %v567_v0 = vmov 0   ;;  %v209_v1 = vld [vmem:[%s773_s1] sm:$0xf]  ;;  %v568_v2 = vmov 839922192   ;;  %v217_v4 = vlaneseq }
  0x3c   : > { %443 = vset.pattern.permute.xlu0 %v567_v0  ;;  %v215_v3 = vunpack.c.l.s4 %v568_v2  ;;  %v208_v9 = vld [vmem:[%s183_s10] sm:$0xff]  ;;  %vm226_vm0 = vcmask 1043456   ;;  %s241_s25 = sld [smem:[#allocation2]]  ;;  %s378_s11 = sshll.u32 %s556_s17, 7 }
  0x3d   : > { %212 = vperm.xlu0 %443, %v209_v1   ;;  %v218_v6 = vshrl.u32 %v217_v4, 7  ;;  %s205_s12 = scalar_lea.vmem [#allocation6], %s370_s6  ;;  %s723_s22 = scalar_lea.hbm %s775_s3, %s378_s11 }
  0x3e   : > { %v216_v5 = vunpack.c.0.s8 %v215_v3  ;;  %s278_s13 = sshll.u32 %s205_s12, 4  ;;  %s262_s23 = scalar_lea.sflag [#allocation5], %s704_s5  ;;  %s725_s13 = int_to_ptr.vmem [resolvable:$true] %s278_s13 }
  0x3f   : > { %s482_s24 = scalar_lea.vmem %s725_s13, 128  ;;  %p784_p9 = scmp.ne.s32.totalorder %s779_s26, 0 }
  0x40   : > { %v219_v7 = vsub.s32 %v216_v5, %v218_v6  ;;  %p483_p8 = scmp.ne.s32.totalorder %s725_s13, %s482_s24  ;;  %s569_s17 = smov [#allocation6]  }
  0x41   : > { %s486_s29 = sshll.u32 %s569_s17, 4  ;;  %s487_s29 = int_to_ptr.vmem [resolvable:$false] %s486_s29 }
  0x42   : > { %v242_v24 = vstv %s241_s25  ;;  %p484_p11 = pnand %p483_p8, %p784_p9  ;;  %s488_s30 = scalar_lea.vmem %s487_s29, 256 }
  0x43   : > { %p489_p7 = scmp.lt.s32.totalorder %s725_s13, %s487_s29  ;;  %p490_p13 = scmp.lt.s32.totalorder %s488_s30, %s482_s24 }
  0x44   : > { %p485_p0 = pneg %p484_p11 }
  0x45   : > { %p491_p3 = por %p490_p13, %p489_p7 }
  0x47   : > { %p492_p6 = pnand %p491_p3, %p485_p0 }
  0xbc   : > { %v213_v8 = vpop.permute.xlu0 %212 }
  0xbd   : > { %v220_v10 = vrot.slane %v213_v8, %v219_v7 }
  0xbf   : > { %v222_v11 = vmul.f32 %v220_v10, %v208_v9 }
  0xc1   : > { %v224_v12 = vcombine.high %v222_v11, %v222_v11  ;;  %v227_v13 = vsel %vm226_vm0, %v222_v11, 0.0 }
  0xc2   : > { %v228_v14 = vrot.slane %v227_v13, 4 }
  0xc3   : > { %v234_v15 = vsel %vm226_vm0, %v224_v12, 0.0 }
  0xc4   : > { %v229_v16 = vadd.f32 %v228_v14, %v227_v13  ;;  %v235_v17 = vrot.slane %v234_v15, 4 }
  0xc6   : > { %v230_v18 = vrot.slane %v229_v16, 2  ;;  %v236_v19 = vadd.f32 %v235_v17, %v234_v15 }
  0xc8   : > { %v231_v20 = vadd.f32 %v230_v18, %v229_v16  ;;  %v237_v21 = vrot.slane %v236_v19, 2 }
  0xca   : > { %v232_v22 = vrot.slane %v231_v20, 1  ;;  %v238_v23 = vadd.f32 %v237_v21, %v236_v19 }
  0xcc   : > { %v233_v25 = vadd.f32 %v232_v22, %v231_v20  ;;  %v239_v26 = vrot.slane %v238_v23, 1 }
  0xce   : > { %v240_v27 = vadd.f32 %v239_v26, %v238_v23  ;;  %v243_v28 = vadd.f32 %v242_v24, %v233_v25 }
  0xd0   : > { %v244_v29 = vadd.f32 %v242_v24, %v240_v27  ;;  %v245_v30 = vsub.f32 0.0, %v243_v28 }
  0xd2   : > { %v246_v31 = vsub.f32 0.0, %v244_v29  ;;  %v247_v32 = vmul.f32 1.442695, %v245_v30 }
  0xd4   : > { %444 = vpow2.f32 %v247_v32  ;;  %v249_v33 = vmul.f32 1.442695, %v246_v31 }
  0xd6   : > { %446 = vpow2.f32 %v249_v33 }
  0xde   : > { %v445_v34 = vpop.eup %444 }
  0xdf   : > { %v251_v35 = vadd.f32 1.0, %v445_v34 }
  0xe0   : > { %v447_v36 = vpop.eup %446 }
  0xe1   : > { %v252_v37 = vadd.f32 1.0, %v447_v36  ;;  %448 = vrcp.f32 %v251_v35 }
  0xe3   : > { %450 = vrcp.f32 %v252_v37 }
  0xeb   : > { %v449_v38 = vpop.eup %448 }
  0xed   : > { %v451_v39 = vpop.eup %450 }
  0xee   : > { %v257_v40 = vcombine.low %v449_v38, %v451_v39 }
  0xf0   : > { %v259_v41 = vmul.f32 %v257_v40, %v208_v9 }
  0xf2   : > { %260 = vst [vmem:[%s205_s12] sm:$0xff] %v259_v41 }
  0xf3   : > { %495 = shalt.err (!%p492_p6)
}
  0xf4   : > { %s496_s4 = scalar_lea.hbm %s723_s22, 128  ;;  %s500_s8 = scalar_lea.hbm %s775_s3, 256 }
  0xf5   : > { %p497_p4 = scmp.ne.s32.totalorder %s723_s22, %s496_s4  ;;  %p501_p1 = scmp.lt.u32.totalorder %s723_s22, %s775_s3 }
  0xf6   : > { %p502_p2 = scmp.lt.u32.totalorder %s500_s8, %s496_s4  ;;  %p504_p8 = scmp.lt.u32.totalorder %s496_s4, %s723_s22 }
  0xf7   : > { %p498_p10 = pnand %p497_p4, %p784_p9 }
  0xf8   : > { %p503_p5 = por %p502_p2, %p501_p1 }
  0xf9   : > { %p499_p12 = pneg %p498_p10 }
  0xfa   : > { %p505_p11 = por %p504_p8, %p503_p5 }
  0xfc   : > { %p506_p0 = pnand %p505_p11, %p499_p12 }
  0xfe   : > { %509 = shalt.err (!%p506_p0)
}
  0xff   : > { %381 = dma.vmem_to_hbm [thread:$0]  (%p784_p9), %s725_s13, 128, %s723_s22, %s262_s23  }
 0x100 PF: > { %s290_s9 = sand.u32 1, %s544_s14   ;;  %p785_p7 = scmp.ne.s32.totalorder %s780_s28, 0 }
 0x101   : > { %p786_p13 = scmp.ge.s32.totalorder %s564_s19, 2  ;;  %s291_s25 = scalar_lea.sflag [#allocation5], %s290_s9 }
 0x103   : > { %p388_p3 = pnand %p786_p13, %p785_p7 }
 0x105   : > { %539 = dma.done.wait (!%p388_p3), %s291_s25, 128  }
 0x106   : > { %541 = vsyncadd (!%p388_p3), %s291_s25, 4294967168  ;;  %s20_s19 = sadd.s32 1, %s564_s19   ;;  %s787_s14 = smov %s548_s15 }
 0x107   : > { %p17_p6 = scmp.ge.s32.totalorder %s20_s19, 4   ;;  %s788_s15 = smov %s552_s16 }
 0x108   : > { %s789_s16 = smov %s649_s27  ;;  %s790_s17 = smov %s560_s18 }
 0x109   : > { %s791_s18 = smov %s793_s21  ;;  %19 = sbr.rel (!%p17_p6) target bundleno = 8 (0x8), region = 77 }
 0x110   :  { %296 = vsyncpa [#allocation4], 1 }
 0x111   :  { %298 = vsyncpa [#allocation4 + $0x1], 1 }
 0x112   :  { %299 = vsyncpa [#allocation5], 1 }
 0x113   :  { %301 = vsyncpa [#allocation5 + $0x1], 1 }

</bundles_post_ra>
